<compile_context>
chip_gen: v6e
topology: v6e:2x2x1
jax: 0.10.0
libtpu: 0.0.40
codegen_flags: <defaults>
</compile_context>

<pallas_src>
import functools

import jax
import jax.numpy as jnp
from jax import lax
from jax.experimental import pallas as pl
from jax.experimental.pallas import tpu as pltpu


def _make_kernel(B, bt, L, D, num_blocks):
    """Builds the per-batch-tile kernel (all sizes are static Python ints)."""

    def kernel(tw_ref, cpf_ref,              # SMEM scalar prefetch: [B_pad] i32, [B_pad*L] i32
               codes_ref,                    # VMEM (auto-pipelined): [bt, L] f32
               in_embed_hbm, node_embed_hbm,  # HBM refs (pl.ANY)
               out_ref,                      # VMEM: [1, 1, 128] f32 partial bce sum
               inp_buf, node_buf,            # VMEM scratch: [2, bt, D], [2, bt, L, D]
               in_sem, node_sem):            # DMA semaphores: (2,), (2,)
        i = pl.program_id(0)

        # ---- manual gather: one row DMA per (row) and per (row, path position) ----------
        def issue_tile(tile, slot):
            base = tile * bt

            def per_row(r, carry):
                w = tw_ref[base + r]
                pltpu.make_async_copy(
                    in_embed_hbm.at[pl.ds(w, 1)],
                    inp_buf.at[slot, pl.ds(r, 1)],
                    in_sem.at[slot],
                ).start()

                def per_node(l, c):
                    p = cpf_ref[(base + r) * L + l]
                    pltpu.make_async_copy(
                        node_embed_hbm.at[pl.ds(p, 1)],
                        node_buf.at[slot, r, pl.ds(l, 1)],
                        node_sem.at[slot],
                    ).start()
                    return c

                lax.fori_loop(0, L, per_node, carry)
                return carry

            lax.fori_loop(0, bt, per_row, 0)

        def wait_tile(slot):
            # Reconstruct matching descriptors; one wait per issued copy (always safe).
            def per_row(r, carry):
                pltpu.make_async_copy(
                    in_embed_hbm.at[pl.ds(0, 1)],
                    inp_buf.at[slot, pl.ds(r, 1)],
                    in_sem.at[slot],
                ).wait()

                def per_node(l, c):
                    pltpu.make_async_copy(
                        node_embed_hbm.at[pl.ds(0, 1)],
                        node_buf.at[slot, r, pl.ds(l, 1)],
                        node_sem.at[slot],
                    ).wait()
                    return c

                lax.fori_loop(0, L, per_node, carry)
                return carry

            lax.fori_loop(0, bt, per_row, 0)

        # Prime the pipeline with tile 0, then always prefetch tile i+1 before computing i.
        @pl.when(i == 0)
        def _():
            issue_tile(0, 0)

        @pl.when(i + 1 < num_blocks)
        def _():
            issue_tile(i + 1, (i + 1) % 2)

        slot = i % 2
        wait_tile(slot)

        # ---- compute: BCE over this batch tile -----------------------------------------
        inp = inp_buf[slot]                           # [bt, D]   table dtype
        node = node_buf[slot]                         # [bt, L, D] table dtype
        prod = node * inp[:, None, :]                 # multiply in table dtype (bf16 stays bf16)
        scores = jnp.sum(prod.astype(jnp.float32), axis=-1)   # f32 accumulation, [bt, L]

        probs = jax.nn.sigmoid(scores)
        eps = jnp.float32(1e-7)
        codes = codes_ref[...]                        # [bt, L] f32 (padding code -1 included,
                                                      # exactly as in the PyTorch reference)
        bce = codes * jnp.log(probs + eps) + (1.0 - codes) * jnp.log(1.0 - probs + eps)

        # Exclude batch-padding rows (rows >= B) added only to round B up to the tile.
        row = lax.broadcasted_iota(jnp.int32, (bt, L), 0)
        valid = (i * bt + row) < B
        bce_sum = jnp.sum(jnp.where(valid, bce, 0.0))

        out_ref[...] = jnp.broadcast_to(bce_sum, (1, 1, 128)).astype(jnp.float32)

    return kernel


def huffman_word2vec_forward(
    in_embed,            # [vocab, D]          embedding table (f32 or bf16)
    node_embed,          # [2*vocab - 1, D]    Huffman node table (f32 or bf16)
    target_words,        # [B]      int
    context_codes,       # [B, L]   float, -1 marks path padding
    context_points,      # [B, L]   int
    *,
    block_b=512,                 # batch rows per grid step (see sizing notes at top)
    vmem_limit_bytes=None,       # None -> derived from the tile sizes
):
    """Reproduces HuffmanWord2Vec.forward; returns a scalar f32 loss (== loss.mean())."""
    B, L = context_points.shape
    D = in_embed.shape[1]

    # mask mean depends only on context_codes -> plain JAX (kernel emits only bce partials).
    mask_total = jnp.sum((context_codes != -1).astype(jnp.float32))

    # Batch tiling: full batch if it fits one tile, else a sublane-aligned tile.
    if B <= block_b:
        bt = B
    else:
        bt = max(8, (block_b // 8) * 8)
    num_blocks = -(-B // bt)
    b_pad = num_blocks * bt - B

    # Pad the tiny index arrays (never the gathered [B,L,D] stream).
    tw = target_words.astype(jnp.int32)
    cp = context_points.astype(jnp.int32)
    codes = context_codes.astype(jnp.float32)
    if b_pad:
        tw = jnp.pad(tw, ((0, b_pad),))                                   # row 0 (valid index)
        cp = jnp.pad(cp, ((0, b_pad), (0, 0)))                            # row 0 (valid index)
        codes = jnp.pad(codes, ((0, b_pad), (0, 0)), constant_values=-1.0)
    cp_flat = cp.reshape(-1)   # 1-D: avoids the [R, C] SMEM padding blowup

    itemsize = in_embed.dtype.itemsize
    if vmem_limit_bytes is None:
        gather_bytes = 2 * bt * (L + 1) * D * itemsize       # 2-slot gather scratch
        codes_bytes = 2 * bt * L * 4                         # double-buffered codes block
        interm_bytes = bt * L * D * (itemsize + 4) + 4 * bt * L * 4
        vmem_limit_bytes = max(
            32 << 20, int(1.6 * (gather_bytes + codes_bytes + interm_bytes)) + (8 << 20)
        )

    kernel = _make_kernel(B, bt, L, D, num_blocks)

    partials = pl.pallas_call(
        kernel,
        out_shape=jax.ShapeDtypeStruct((num_blocks, 1, 128), jnp.float32),
        grid_spec=pltpu.PrefetchScalarGridSpec(
            num_scalar_prefetch=2,                       # target_words, context_points (flat)
            grid=(num_blocks,),
            in_specs=[
                pl.BlockSpec((bt, L), lambda i, *_: (i, 0)),   # codes tile
                pl.BlockSpec(memory_space=pl.ANY),             # in_embed stays in HBM
                pl.BlockSpec(memory_space=pl.ANY),             # node_embed stays in HBM
            ],
            out_specs=pl.BlockSpec((1, 1, 128), lambda i, *_: (i, 0, 0)),
            scratch_shapes=[
                pltpu.VMEM((2, bt, D), in_embed.dtype),        # gathered in_embed rows
                pltpu.VMEM((2, bt, L, D), node_embed.dtype),   # gathered node rows
                pltpu.SemaphoreType.DMA((2,)),
                pltpu.SemaphoreType.DMA((2,)),
            ],
        ),
        compiler_params=pltpu.CompilerParams(
            # "arbitrary": the cross-step DMA prefetch chain requires sequential grid steps.
            dimension_semantics=("arbitrary",),
            vmem_limit_bytes=vmem_limit_bytes,
        ),
    )(tw, cp_flat, codes, in_embed, node_embed)

    bce_total = jnp.sum(partials[:, 0, 0])
    # torch: loss = (-sum(bce)) * mask  (scalar * [B,L]); loss.mean() = (-sum) * mean(mask)
    return -bce_total * mask_total / jnp.float32(B * L)


def _reference_forward(in_embed, node_embed, target_words, context_codes, context_points):
    """Pure-JAX mirror of the PyTorch forward, for correctness checking."""
    input_vectors = jnp.take(in_embed, target_words, axis=0).astype(jnp.float32)
    node_vectors = jnp.take(node_embed, context_points, axis=0).astype(jnp.float32)
    codes = context_codes.astype(jnp.float32)
    scores = jnp.einsum("bld,bd->bl", node_vectors, input_vectors)
    probs = jax.nn.sigmoid(scores)
    bce = codes * jnp.log(probs + 1e-7) + (1.0 - codes) * jnp.log(1.0 - probs + 1e-7)
    mask = (codes != -1.0).astype(jnp.float32)
    return -jnp.sum(bce) * jnp.mean(mask)


def init_params(key, vocab_size, embed_dim, dtype=jnp.float32):
    # nn.init.xavier_uniform_ on [vocab, dim]: bound = sqrt(6 / (fan_in + fan_out))
    bound = (6.0 / (vocab_size + embed_dim)) ** 0.5
    in_embed = jax.random.uniform(
        key, (vocab_size, embed_dim), dtype=jnp.float32, minval=-bound, maxval=bound
    ).astype(dtype)
    # nn.init.constant_(node_embed.weight, 0.0) over 2*vocab_size - 1 nodes
    node_embed = jnp.zeros((2 * vocab_size - 1, embed_dim), dtype=dtype)
    return in_embed, node_embed


if __name__ == "__main__":
    vocab_size = 50
    embed_dim = 128          # lane-dense D (multiple of 128 recommended)
    batch = 20
    path_length = 8

    key = jax.random.PRNGKey(0)
    k_emb, k_node, k_tgt, k_pts, k_codes, k_pad = jax.random.split(key, 6)

    in_embed, node_embed = init_params(k_emb, vocab_size, embed_dim, dtype=jnp.float32)
    # The module initializes node_embed to zeros; perturb it here so the numerics check
    # exercises non-trivial scores / sigmoid / log instead of the all-0.5 degenerate case.
    node_embed = node_embed + 0.05 * jax.random.normal(k_node, node_embed.shape, jnp.float32)

    target_words = jax.random.randint(k_tgt, (batch,), 0, vocab_size, dtype=jnp.int32)
    context_points = jax.random.randint(
        k_pts, (batch, path_length), 0, 2 * vocab_size - 1, dtype=jnp.int32
    )
    codes01 = jax.random.randint(k_codes, (batch, path_length), 0, 2, dtype=jnp.int32)
    pad_mask = jax.random.bernoulli(k_pad, 0.25, (batch, path_length))
    context_codes = jnp.where(pad_mask, -1, codes01).astype(jnp.float32)

    # block_b=8 forces multiple batch tiles + batch padding, exercising the fused-gather
    # double-buffer chain and the in-kernel row mask on this small example.
    fwd = jax.jit(functools.partial(huffman_word2vec_forward, block_b=8))
    loss = fwd(in_embed, node_embed, target_words, context_codes, context_points)
    jax.block_until_ready(loss)

    ref = _reference_forward(
        in_embed, node_embed, target_words, context_codes, context_points
    )
    if not jnp.allclose(loss, ref, rtol=1e-5, atol=1e-4):
        raise AssertionError(f"kernel loss {loss} != reference {ref}")

    print("KERNEL_OK")
</pallas_src>

<mosaic_0001>
module attributes {stable_mosaic.version = 11 : i64} {
  func.func @kernel(%arg0: i32, %arg1: memref<24xi32, #tpu.memory_space<smem>>, %arg2: memref<192xi32, #tpu.memory_space<smem>>, %arg3: memref<8x8xf32, #tpu.memory_space<vmem>>, %arg4: memref<50x128xf32, #tpu.memory_space<any>>, %arg5: memref<99x128xf32, #tpu.memory_space<any>>, %arg6: memref<1x1x128xf32, #tpu.memory_space<vmem>>, %arg7: memref<2x8x128xf32, #tpu.memory_space<vmem>>, %arg8: memref<2x8x8x128xf32, #tpu.memory_space<vmem>>, %arg9: memref<2x!tpu.dma_semaphore, #tpu.memory_space<semaphore_mem>>, %arg10: memref<2x!tpu.dma_semaphore, #tpu.memory_space<semaphore_mem>>) attributes {dimension_semantics = [#tpu.dimension_semantics<arbitrary>], iteration_bounds = array<i64: 3>, scalar_prefetch = 2 : i64, scratch_operands = 4 : i64, tpu.core_type = #tpu.core_type<tc>, window_params = [{transform_indices = @transform_0, window_bounds = array<i64: 8, 8>}, {}, {}, {transform_indices = @transform_3, window_bounds = array<i64: 1, 1, 128>}]} {
    %c0_i32 = arith.constant 0 : i32
    %0 = arith.cmpi eq, %arg0, %c0_i32 : i32
    %1 = arith.extui %0 : i1 to i32
    %c0_i32_0 = arith.constant 0 : i32
    %2 = arith.cmpi ne, %1, %c0_i32_0 : i32
    scf.if %2 {
      %c0_i32_27 = arith.constant 0 : i32
      %c8_i32_28 = arith.constant 8 : i32
      %61 = arith.addi %c0_i32_27, %c8_i32_28 : i32
      %c1_i32_29 = arith.constant 1 : i32
      scf.for %arg11 = %c0_i32_27 to %61 step %c1_i32_29  : i32 {
        %c0_i32_31 = arith.constant 0 : i32
        %62 = arith.addi %c0_i32_31, %arg11 : i32
        %63 = arith.index_cast %62 : i32 to index
        %64 = memref.load %arg1[%63] : memref<24xi32, #tpu.memory_space<smem>>
        %c0_i32_32 = arith.constant 0 : i32
        %c0_i32_33 = arith.constant 0 : i32
        %c0_i32_34 = arith.constant 0 : i32
        %65 = tpu.memref_slice %arg4[%64, %c0_i32_34] : memref<50x128xf32, #tpu.memory_space<any>> -> memref<1x128xf32, #tpu.memory_space<any>>
        %c0_i32_35 = arith.constant 0 : i32
        %66 = tpu.memref_slice %arg7[%c0_i32_32, %arg11, %c0_i32_35] : memref<2x8x128xf32, #tpu.memory_space<vmem>> -> memref<1x1x128xf32, #tpu.memory_space<vmem>>
        %67 = tpu.memref_squeeze %66 : memref<1x1x128xf32, #tpu.memory_space<vmem>> -> memref<1x128xf32, #tpu.memory_space<vmem>>
        %68 = tpu.memref_slice %arg9[%c0_i32_33] : memref<2x!tpu.dma_semaphore, #tpu.memory_space<semaphore_mem>> -> memref<1x!tpu.dma_semaphore, #tpu.memory_space<semaphore_mem>>
        %69 = tpu.memref_squeeze %68 : memref<1x!tpu.dma_semaphore, #tpu.memory_space<semaphore_mem>> -> memref<!tpu.dma_semaphore, #tpu.memory_space<semaphore_mem>>
        tpu.enqueue_dma source(%65 : memref<1x128xf32, #tpu.memory_space<any>>) target(%67 : memref<1x128xf32, #tpu.memory_space<vmem>>) target_semaphore(%69 : memref<!tpu.dma_semaphore, #tpu.memory_space<semaphore_mem>>)
        %c0_i32_36 = arith.constant 0 : i32
        %c8_i32_37 = arith.constant 8 : i32
        %70 = arith.addi %c0_i32_36, %c8_i32_37 : i32
        %c1_i32_38 = arith.constant 1 : i32
        scf.for %arg12 = %c0_i32_36 to %70 step %c1_i32_38  : i32 {
          %c0_i32_40 = arith.constant 0 : i32
          %71 = arith.addi %c0_i32_40, %arg11 : i32
          %c8_i32_41 = arith.constant 8 : i32
          %72 = arith.muli %71, %c8_i32_41 : i32
          %73 = arith.addi %72, %arg12 : i32
          %74 = arith.index_cast %73 : i32 to index
          %75 = memref.load %arg2[%74] : memref<192xi32, #tpu.memory_space<smem>>
          %c0_i32_42 = arith.constant 0 : i32
          %c0_i32_43 = arith.constant 0 : i32
          %c0_i32_44 = arith.constant 0 : i32
          %76 = tpu.memref_slice %arg5[%75, %c0_i32_44] : memref<99x128xf32, #tpu.memory_space<any>> -> memref<1x128xf32, #tpu.memory_space<any>>
          %c0_i32_45 = arith.constant 0 : i32
          %77 = tpu.memref_slice %arg8[%c0_i32_42, %arg11, %arg12, %c0_i32_45] : memref<2x8x8x128xf32, #tpu.memory_space<vmem>> -> memref<1x1x1x128xf32, #tpu.memory_space<vmem>>
          %78 = tpu.memref_squeeze %77 : memref<1x1x1x128xf32, #tpu.memory_space<vmem>> -> memref<1x128xf32, #tpu.memory_space<vmem>>
          %79 = tpu.memref_slice %arg10[%c0_i32_43] : memref<2x!tpu.dma_semaphore, #tpu.memory_space<semaphore_mem>> -> memref<1x!tpu.dma_semaphore, #tpu.memory_space<semaphore_mem>>
          %80 = tpu.memref_squeeze %79 : memref<1x!tpu.dma_semaphore, #tpu.memory_space<semaphore_mem>> -> memref<!tpu.dma_semaphore, #tpu.memory_space<semaphore_mem>>
          tpu.enqueue_dma source(%76 : memref<1x128xf32, #tpu.memory_space<any>>) target(%78 : memref<1x128xf32, #tpu.memory_space<vmem>>) target_semaphore(%80 : memref<!tpu.dma_semaphore, #tpu.memory_space<semaphore_mem>>)
        }
        %c8_i32_39 = arith.constant 8 : i32
      }
      %c8_i32_30 = arith.constant 8 : i32
    } else {
    }
    %c1_i32 = arith.constant 1 : i32
    %3 = arith.addi %arg0, %c1_i32 : i32
    %c3_i32 = arith.constant 3 : i32
    %4 = arith.cmpi slt, %3, %c3_i32 : i32
    %5 = arith.extui %4 : i1 to i32
    %c0_i32_1 = arith.constant 0 : i32
    %6 = arith.cmpi ne, %5, %c0_i32_1 : i32
    scf.if %6 {
      %c1_i32_27 = arith.constant 1 : i32
      %61 = arith.addi %arg0, %c1_i32_27 : i32
      %c1_i32_28 = arith.constant 1 : i32
      %62 = arith.addi %arg0, %c1_i32_28 : i32
      %c2_i32_29 = arith.constant 2 : i32
      %c0_i32_30 = arith.constant 0 : i32
      %63 = arith.cmpi eq, %c2_i32_29, %c0_i32_30 : i32
      %c1_i32_31 = arith.constant 1 : i32
      %64 = arith.select %63, %c1_i32_31, %c2_i32_29 : i32
      %65 = arith.remsi %62, %64 : i32
      %c0_i32_32 = arith.constant 0 : i32
      %66 = arith.cmpi ne, %65, %c0_i32_32 : i32
      %c0_i32_33 = arith.constant 0 : i32
      %67 = arith.cmpi slt, %65, %c0_i32_33 : i32
      %c0_i32_34 = arith.constant 0 : i32
      %68 = arith.cmpi slt, %64, %c0_i32_34 : i32
      %69 = arith.xori %67, %68 : i1
      %70 = arith.andi %69, %66 : i1
      %71 = arith.addi %65, %64 : i32
      %72 = arith.select %70, %71, %65 : i32
      %c8_i32_35 = arith.constant 8 : i32
      %73 = arith.muli %61, %c8_i32_35 : i32
      %c0_i32_36 = arith.constant 0 : i32
      %c8_i32_37 = arith.constant 8 : i32
      %74 = arith.addi %c0_i32_36, %c8_i32_37 : i32
      %c1_i32_38 = arith.constant 1 : i32
      scf.for %arg11 = %c0_i32_36 to %74 step %c1_i32_38  : i32 {
        %75 = arith.addi %73, %arg11 : i32
        %76 = arith.index_cast %75 : i32 to index
        %77 = memref.load %arg1[%76] : memref<24xi32, #tpu.memory_space<smem>>
        %c0_i32_40 = arith.constant 0 : i32
        %78 = tpu.memref_slice %arg4[%77, %c0_i32_40] : memref<50x128xf32, #tpu.memory_space<any>> -> memref<1x128xf32, #tpu.memory_space<any>>
        %c0_i32_41 = arith.constant 0 : i32
        %79 = tpu.memref_slice %arg7[%72, %arg11, %c0_i32_41] : memref<2x8x128xf32, #tpu.memory_space<vmem>> -> memref<1x1x128xf32, #tpu.memory_space<vmem>>
        %80 = tpu.memref_squeeze %79 : memref<1x1x128xf32, #tpu.memory_space<vmem>> -> memref<1x128xf32, #tpu.memory_space<vmem>>
        %81 = tpu.memref_slice %arg9[%72] : memref<2x!tpu.dma_semaphore, #tpu.memory_space<semaphore_mem>> -> memref<1x!tpu.dma_semaphore, #tpu.memory_space<semaphore_mem>>
        %82 = tpu.memref_squeeze %81 : memref<1x!tpu.dma_semaphore, #tpu.memory_space<semaphore_mem>> -> memref<!tpu.dma_semaphore, #tpu.memory_space<semaphore_mem>>
        tpu.enqueue_dma source(%78 : memref<1x128xf32, #tpu.memory_space<any>>) target(%80 : memref<1x128xf32, #tpu.memory_space<vmem>>) target_semaphore(%82 : memref<!tpu.dma_semaphore, #tpu.memory_space<semaphore_mem>>)
        %c0_i32_42 = arith.constant 0 : i32
        %c8_i32_43 = arith.constant 8 : i32
        %83 = arith.addi %c0_i32_42, %c8_i32_43 : i32
        %c1_i32_44 = arith.constant 1 : i32
        scf.for %arg12 = %c0_i32_42 to %83 step %c1_i32_44  : i32 {
          %84 = arith.addi %73, %arg11 : i32
          %c8_i32_46 = arith.constant 8 : i32
          %85 = arith.muli %84, %c8_i32_46 : i32
          %86 = arith.addi %85, %arg12 : i32
          %87 = arith.index_cast %86 : i32 to index
          %88 = memref.load %arg2[%87] : memref<192xi32, #tpu.memory_space<smem>>
          %c0_i32_47 = arith.constant 0 : i32
          %89 = tpu.memref_slice %arg5[%88, %c0_i32_47] : memref<99x128xf32, #tpu.memory_space<any>> -> memref<1x128xf32, #tpu.memory_space<any>>
          %c0_i32_48 = arith.constant 0 : i32
          %90 = tpu.memref_slice %arg8[%72, %arg11, %arg12, %c0_i32_48] : memref<2x8x8x128xf32, #tpu.memory_space<vmem>> -> memref<1x1x1x128xf32, #tpu.memory_space<vmem>>
          %91 = tpu.memref_squeeze %90 : memref<1x1x1x128xf32, #tpu.memory_space<vmem>> -> memref<1x128xf32, #tpu.memory_space<vmem>>
          %92 = tpu.memref_slice %arg10[%72] : memref<2x!tpu.dma_semaphore, #tpu.memory_space<semaphore_mem>> -> memref<1x!tpu.dma_semaphore, #tpu.memory_space<semaphore_mem>>
          %93 = tpu.memref_squeeze %92 : memref<1x!tpu.dma_semaphore, #tpu.memory_space<semaphore_mem>> -> memref<!tpu.dma_semaphore, #tpu.memory_space<semaphore_mem>>
          tpu.enqueue_dma source(%89 : memref<1x128xf32, #tpu.memory_space<any>>) target(%91 : memref<1x128xf32, #tpu.memory_space<vmem>>) target_semaphore(%93 : memref<!tpu.dma_semaphore, #tpu.memory_space<semaphore_mem>>)
        }
        %c8_i32_45 = arith.constant 8 : i32
      }
      %c8_i32_39 = arith.constant 8 : i32
    } else {
    }
    %c2_i32 = arith.constant 2 : i32
    %c0_i32_2 = arith.constant 0 : i32
    %7 = arith.cmpi eq, %c2_i32, %c0_i32_2 : i32
    %c1_i32_3 = arith.constant 1 : i32
    %8 = arith.select %7, %c1_i32_3, %c2_i32 : i32
    %9 = arith.remsi %arg0, %8 : i32
    %c0_i32_4 = arith.constant 0 : i32
    %10 = arith.cmpi ne, %9, %c0_i32_4 : i32
    %c0_i32_5 = arith.constant 0 : i32
    %11 = arith.cmpi slt, %9, %c0_i32_5 : i32
    %c0_i32_6 = arith.constant 0 : i32
    %12 = arith.cmpi slt, %8, %c0_i32_6 : i32
    %13 = arith.xori %11, %12 : i1
    %14 = arith.andi %13, %10 : i1
    %15 = arith.addi %9, %8 : i32
    %16 = arith.select %14, %15, %9 : i32
    %c0_i32_7 = arith.constant 0 : i32
    %c8_i32 = arith.constant 8 : i32
    %17 = arith.addi %c0_i32_7, %c8_i32 : i32
    %c1_i32_8 = arith.constant 1 : i32
    scf.for %arg11 = %c0_i32_7 to %17 step %c1_i32_8  : i32 {
      %c0_i32_27 = arith.constant 0 : i32
      %c0_i32_28 = arith.constant 0 : i32
      %61 = tpu.memref_slice %arg4[%c0_i32_27, %c0_i32_28] : memref<50x128xf32, #tpu.memory_space<any>> -> memref<1x128xf32, #tpu.memory_space<any>>
      %c0_i32_29 = arith.constant 0 : i32
      %62 = tpu.memref_slice %arg7[%16, %arg11, %c0_i32_29] : memref<2x8x128xf32, #tpu.memory_space<vmem>> -> memref<1x1x128xf32, #tpu.memory_space<vmem>>
      %63 = tpu.memref_squeeze %62 : memref<1x1x128xf32, #tpu.memory_space<vmem>> -> memref<1x128xf32, #tpu.memory_space<vmem>>
      %64 = tpu.memref_slice %arg9[%16] : memref<2x!tpu.dma_semaphore, #tpu.memory_space<semaphore_mem>> -> memref<1x!tpu.dma_semaphore, #tpu.memory_space<semaphore_mem>>
      %65 = tpu.memref_squeeze %64 : memref<1x!tpu.dma_semaphore, #tpu.memory_space<semaphore_mem>> -> memref<!tpu.dma_semaphore, #tpu.memory_space<semaphore_mem>>
      tpu.wait_dma2 semaphore(%65 : memref<!tpu.dma_semaphore, #tpu.memory_space<semaphore_mem>>) src(%61 : memref<1x128xf32, #tpu.memory_space<any>>) dst(%63 : memref<1x128xf32, #tpu.memory_space<vmem>>)
      %c0_i32_30 = arith.constant 0 : i32
      %c8_i32_31 = arith.constant 8 : i32
      %66 = arith.addi %c0_i32_30, %c8_i32_31 : i32
      %c1_i32_32 = arith.constant 1 : i32
      scf.for %arg12 = %c0_i32_30 to %66 step %c1_i32_32  : i32 {
        %c0_i32_34 = arith.constant 0 : i32
        %c0_i32_35 = arith.constant 0 : i32
        %67 = tpu.memref_slice %arg5[%c0_i32_34, %c0_i32_35] : memref<99x128xf32, #tpu.memory_space<any>> -> memref<1x128xf32, #tpu.memory_space<any>>
        %c0_i32_36 = arith.constant 0 : i32
        %68 = tpu.memref_slice %arg8[%16, %arg11, %arg12, %c0_i32_36] : memref<2x8x8x128xf32, #tpu.memory_space<vmem>> -> memref<1x1x1x128xf32, #tpu.memory_space<vmem>>
        %69 = tpu.memref_squeeze %68 : memref<1x1x1x128xf32, #tpu.memory_space<vmem>> -> memref<1x128xf32, #tpu.memory_space<vmem>>
        %70 = tpu.memref_slice %arg10[%16] : memref<2x!tpu.dma_semaphore, #tpu.memory_space<semaphore_mem>> -> memref<1x!tpu.dma_semaphore, #tpu.memory_space<semaphore_mem>>
        %71 = tpu.memref_squeeze %70 : memref<1x!tpu.dma_semaphore, #tpu.memory_space<semaphore_mem>> -> memref<!tpu.dma_semaphore, #tpu.memory_space<semaphore_mem>>
        tpu.wait_dma2 semaphore(%71 : memref<!tpu.dma_semaphore, #tpu.memory_space<semaphore_mem>>) src(%67 : memref<1x128xf32, #tpu.memory_space<any>>) dst(%69 : memref<1x128xf32, #tpu.memory_space<vmem>>)
      }
      %c8_i32_33 = arith.constant 8 : i32
    }
    %c8_i32_9 = arith.constant 8 : i32
    %18 = arith.index_cast %16 : i32 to index
    %c0 = arith.constant 0 : index
    %c0_10 = arith.constant 0 : index
    %19 = vector.load %arg7[%18, %c0, %c0_10] : memref<2x8x128xf32, #tpu.memory_space<vmem>>, vector<1x8x128xf32>
    %20 = vector.shape_cast %19 : vector<1x8x128xf32> to vector<8x128xf32>
    %21 = arith.index_cast %16 : i32 to index
    %c0_11 = arith.constant 0 : index
    %c0_12 = arith.constant 0 : index
    %c0_13 = arith.constant 0 : index
    %22 = vector.load %arg8[%21, %c0_11, %c0_12, %c0_13] : memref<2x8x8x128xf32, #tpu.memory_space<vmem>>, vector<1x8x8x128xf32>
    %23 = vector.shape_cast %22 : vector<1x8x8x128xf32> to vector<8x8x128xf32>
    %24 = vector.shape_cast %20 : vector<8x128xf32> to vector<8x1x128xf32>
    %25 = vector.broadcast %24 : vector<8x1x128xf32> to vector<8x8x128xf32>
    %26 = arith.mulf %23, %25 : vector<8x8x128xf32>
    %cst = arith.constant dense<0.000000e+00> : vector<8x8xf32>
    %27 = vector.multi_reduction <add>, %26, %cst [2] : vector<8x8x128xf32> to vector<8x8xf32>
    %28 = arith.negf %27 : vector<8x8xf32>
    %29 = math.exp %28 : vector<8x8xf32>
    %cst_14 = arith.constant 1.000000e+00 : f32
    %30 = vector.broadcast %cst_14 : f32 to vector<8x8xf32>
    %31 = arith.addf %30, %29 : vector<8x8xf32>
    %32 = arith.divf %30, %31 : vector<8x8xf32>
    %c0_15 = arith.constant 0 : index
    %c0_16 = arith.constant 0 : index
    %33 = vector.load %arg3[%c0_15, %c0_16] : memref<8x8xf32, #tpu.memory_space<vmem>>, vector<8x8xf32>
    %cst_17 = arith.constant 1.000000e-07 : f32
    %34 = vector.broadcast %cst_17 : f32 to vector<8x8xf32>
    %35 = arith.addf %32, %34 : vector<8x8xf32>
    %36 = math.log %35 : vector<8x8xf32>
    %37 = arith.mulf %33, %36 : vector<8x8xf32>
    %cst_18 = arith.constant 1.000000e+00 : f32
    %38 = vector.broadcast %cst_18 : f32 to vector<8x8xf32>
    %39 = arith.subf %38, %33 : vector<8x8xf32>
    %cst_19 = arith.constant 1.000000e+00 : f32
    %40 = vector.broadcast %cst_19 : f32 to vector<8x8xf32>
    %41 = arith.subf %40, %32 : vector<8x8xf32>
    %cst_20 = arith.constant 1.000000e-07 : f32
    %42 = vector.broadcast %cst_20 : f32 to vector<8x8xf32>
    %43 = arith.addf %41, %42 : vector<8x8xf32>
    %44 = math.log %43 : vector<8x8xf32>
    %45 = arith.mulf %39, %44 : vector<8x8xf32>
    %46 = arith.addf %37, %45 : vector<8x8xf32>
    %47 = tpu.iota {dimensions = array<i32: 0>} : vector<8x8xi32>
    %c8_i32_21 = arith.constant 8 : i32
    %48 = arith.muli %arg0, %c8_i32_21 : i32
    %49 = vector.broadcast %48 : i32 to vector<8x8xi32>
    %50 = arith.addi %49, %47 : vector<8x8xi32>
    %c20_i32 = arith.constant 20 : i32
    %51 = vector.broadcast %c20_i32 : i32 to vector<8x8xi32>
    %52 = arith.cmpi slt, %50, %51 : vector<8x8xi32>
    %cst_22 = arith.constant 0.000000e+00 : f32
    %53 = vector.broadcast %cst_22 : f32 to vector<8x8xf32>
    %54 = arith.select %52, %46, %53 : vector<8x8xi1>, vector<8x8xf32>
    %55 = vector.shape_cast %54 : vector<8x8xf32> to vector<1x8x8xf32>
    %cst_23 = arith.constant dense<0.000000e+00> : vector<1xf32>
    %56 = vector.multi_reduction <add>, %55, %cst_23 [1, 2] : vector<1x8x8xf32> to vector<1xf32>
    %57 = vector.shape_cast %56 : vector<1xf32> to vector<1x1x1xf32>
    %58 = vector.extract %57[0, 0, 0] : f32 from vector<1x1x1xf32>
    %59 = vector.broadcast %58 : f32 to vector<1x1x128xf32>
    %c0_24 = arith.constant 0 : index
    %c0_25 = arith.constant 0 : index
    %c0_26 = arith.constant 0 : index
    %60 = vector.load %arg6[%c0_24, %c0_25, %c0_26] : memref<1x1x128xf32, #tpu.memory_space<vmem>>, vector<1x1x128xf32>
    tpu.vector_store %arg6[%c0_24, %c0_25, %c0_26], %59 {strides = array<i32>} : memref<1x1x128xf32, #tpu.memory_space<vmem>>, vector<1x1x128xf32>,
    return
  }
  func.func @transform_0(%arg0: i32, %arg1: memref<24xi32, #tpu.memory_space<smem>>, %arg2: memref<192xi32, #tpu.memory_space<smem>>) -> (i32, i32) {
    %c0_i32 = arith.constant 0 : i32
    %c0_i32_0 = arith.constant 0 : i32
    return %arg0, %c0_i32 : i32, i32
  }
  func.func @transform_3(%arg0: i32, %arg1: memref<24xi32, #tpu.memory_space<smem>>, %arg2: memref<192xi32, #tpu.memory_space<smem>>) -> (i32, i32, i32) {
    %c0_i32 = arith.constant 0 : i32
    %c0_i32_0 = arith.constant 0 : i32
    %c0_i32_1 = arith.constant 0 : i32
    return %arg0, %c0_i32, %c0_i32_0 : i32, i32, i32
  }
}

</mosaic_0001>

<bundles_post_ra>
// kernel: huffman_word2vec_forward.1
= control target key start
LH: loop header
LB: loop body
LE: loop exit
PB: predicated region body
PF: predicated region fallthrough
CT: control target
= control target key end

     0   :  { %s1366_s0 = inlined_call_operand.vmem [shape: s32[24], index: 0, kind: input, shape index: {}]   ;;  %s1367_s2 = inlined_call_operand.vmem [shape: f32[24,8], index: 2, kind: input, shape index: {}]   ;;  %s1368_s3 = inlined_call_operand.vmem [shape: f32[50,128], index: 3, kind: input, shape index: {}]   ;;  %s1369_s4 = inlined_call_operand.vmem [shape: f32[99,128], index: 4, kind: input, shape index: {}]   ;;  %s1370_s5 = inlined_call_operand.vmem [shape: f32[3,1,128], index: 5, kind: output, shape index: {}]   ;;  %s1371_s1 = inlined_call_operand.vmem [shape: s32[192], index: 1, kind: input, shape index: {}]  }
   0x1   :  { %s10_s20 = sshll.u32 %s1366_s0, 4  ;;  %s14_s23 = sshll.u32 %s1371_s1, 4  ;;  %s11_s20 = int_to_ptr.vmem [resolvable:$true] %s10_s20  ;;  %s15_s23 = int_to_ptr.vmem [resolvable:$true] %s14_s23 }
   0x2   :  { %s1104_s24 = scalar_lea.vmem %s11_s20, 16  ;;  %p1109_p1 = scmp.lt.s32.totalorder %s11_s20, %s11_s20 }
   0x3   :  { %p1105_p0 = scmp.ne.s32.totalorder %s11_s20, %s1104_s24  ;;  %p1110_p2 = scmp.lt.s32.totalorder %s1104_s24, %s1104_s24 }
   0x5   :  { %p1111_p3 = por %p1110_p2, %p1109_p1 }
   0x7   :  { %p1112_p4 = pnand %p1111_p3, %p1105_p0 }
   0x9   :  { %1115 = shalt.err (!%p1112_p4)  }
   0xa   :  { %s1190_s25 = smov [#allocation7]   ;;  %s1116_s26 = scalar_lea.vmem %s15_s23, 32 }
   0xb   :  { %13 = dma.vmem_to_smem %s11_s20, 16, %s1190_s25, [#allocation6] }
   0xc   :  { %p1117_p5 = scmp.ne.s32.totalorder %s15_s23, %s1116_s26  ;;  %p1121_p6 = scmp.lt.s32.totalorder %s15_s23, %s15_s23 }
   0xd   :  { %p1122_p7 = scmp.lt.s32.totalorder %s1116_s26, %s1116_s26 }
   0xf   :  { %p1123_p8 = por %p1122_p7, %p1121_p6 }
  0x11   :  { %p1124_p9 = pnand %p1123_p8, %p1117_p5 }
  0x13   :  { %1127 = shalt.err (!%p1124_p9)  }
  0x14   :  { %s1191_s0 = smov [#allocation8]  }
  0x15   :  { %17 = dma.vmem_to_smem %s15_s23, 32, %s1191_s0, [#allocation6] }
  0x16   :  { %1156 = dma.done.wait [#allocation6], 48 }
  0x17   :  { %1157 = vsyncadd [#allocation6], 4294967248 }
  0x18   :  { %19 = sfence }
  0x19   :  { %s1229_s1 = smov 0  }
  0x1a LB: > { %s1235_s27 = sadd.s32 4294967295, %s1164_s1   ;;  %p943_p10 = scmp.ge.s32.totalorder %s1164_s1, 1  ;;  %s1164_s1 = sphi %s1229_s1, %s25_s1  }
  0x1b   : > { %p100_p11 = scmp.lt.s32.totalorder %s1164_s1, 4 }
  0x1d   : > { %p101_p12 = pnand %p943_p10, %p100_p11 }
  0x1e   : > { %p117_p13 = scmp.lt.s32.totalorder (!%p101_p12), %s1235_s27, 2  ;;  %p945_p0 = scmp.ne.s32.totalorder (!%p101_p12), %s1235_s27, 0 }
  0x1f   : > { %104 = sbr.rel (%p101_p12) target bundleno = 574 (0x23e), region = 24 }
  0x24   : > { %s1241_s28 = scalar_select %p117_p13, %s1235_s27, 2 }
  0x25   : > { %127 = sbr.rel (%p945_p0) target bundleno = 76 (0x4c), region = 28  ;;  %s1254_s11 = smov (!%p945_p0), 0  }
  0x26   : > { %s944_s29 = sshll.u32 %s1241_s28, 3  ;;  %s123_s7 = scalar_lea.vmem %s1370_s5, %s1241_s28 }
  0x27   : > { %s1251_s10 = scalar_lea.vmem %s1367_s2, %s944_s29 }
  0x2a LB: >> { %s134_s12 = sld [smem:[#allocation7 + %s1168_s11]]  ;;  %s136_s16 = scalar_lea.vmem [#allocation2], %s1168_s11  ;;  %s1168_s11 = sphi %s1254_s11, %s133_s11  }
  0x30   : >> { %s135_s15 = scalar_lea.vmem %s1368_s3, %s134_s12 }
  0x31   : >> { %v155_v0 = vld [vmem:[%s135_s15] sm:$0x1] }
  0x32   : >> { %156 = vst [vmem:[%s136_s16] sm:$0x1] %v155_v0 }
  0x33   : >> { %182 = vsyncadd [#allocation4], 16  ;;  %s1170_s17 = smov 0  }
  0x34 LB: >>> { %s946_s18 = sshll.u32 %s1168_s11, 3  ;;  %s1172_s17 = sphi %s1170_s17, %s188_s17  }
  0x35   : >>> { %s190_s19 = sadd.s32 %s1172_s17, %s946_s18 }
  0x36   : >>> { %s191_s20 = sld [smem:[#allocation8 + %s190_s19]]  ;;  %s194_s24 = scalar_lea.vmem [#allocation3], %s190_s19 }
  0x3c   : >>> { %s192_s23 = scalar_lea.vmem %s1369_s4, %s191_s20 }
  0x3d   : >>> { %v213_v1 = vld [vmem:[%s192_s23] sm:$0x1] }
  0x3e   : >>> { %214 = vst [vmem:[%s194_s24] sm:$0x1] %v213_v1 }
  0x3f   : >>> { %240 = vsyncadd [#allocation5], 16  ;;  %s188_s17 = sadd.s32 1, %s1172_s17  }
  0x40   : >>> { %p185_p1 = scmp.ge.s32.totalorder %s188_s17, 8  }
  0x41   : >> { %s133_s11 = sadd.s32 (%p185_p1), 1, %s1168_s11  }
  0x42   : >> { %187 = sbr.rel (!%p185_p1) target bundleno = 52 (0x34), region = 280  ;;  %p130_p2 = scmp.ge.s32.totalorder (%p185_p1), %s133_s11, 8  }
  0x47   : > { %132 = sbr.rel (!%p130_p2) target bundleno = 42 (0x2a), region = 291 }
  0x4c PF: > { %s241_s25 = sadd.s32 1, %s1235_s27 }
  0x4d   : > { %p947_p3 = scmp.ge.s32.totalorder %s241_s25, 3 }
  0x4e   : > { %p246_p4 = scmp.lt.s32.totalorder (!%p947_p3), %s241_s25, 0  ;;  %s247_s26 = ssub.s32 (!%p947_p3), 0, %s241_s25 }
  0x4f   : > { %245 = sbr.rel (%p947_p3) target bundleno = 123 (0x7b), region = 106  ;;  %s948_s0 = smin.u32 (!%p947_p3), %s247_s26, %s241_s25 }
  0x50   : > { %s976_s29 = sshll.u32 (!%p947_p3), %s1235_s27, 3  ;;  %s249_s30 = sand.u32 (!%p947_p3), 1, %s948_s0  }
  0x51   : > { %s1267_s6 = sadd.s32 (!%p947_p3), 8, %s976_s29  ;;  %s250_s8 = ssub.s32 (!%p947_p3), 0, %s249_s30 }
  0x52   : > { %s1271_s11 = smov (!%p947_p3), 0  }
  0x54   : > { %s1373_s8 = smov (!%p246_p4, %s250_s8), %s249_s30 }
  0x55   : > { %p950_p5 = scmp.lt.s32.totalorder %s1373_s8, 0  ;;  %s256_s9 = sadd.s32 2, %s1373_s8 }
  0x57   : > { %s1375_s9 = smov (!%p950_p5, %s256_s9), %s1373_s8 }
  0x58 LB: >> { %s1278_s12 = sadd.s32 %s1176_s11, %s1267_s6  ;;  %s952_s13 = sshll.u32 %s1375_s9, 3  ;;  %s1176_s11 = sphi %s1271_s11, %s264_s11  }
  0x59   : >> { %s266_s14 = sld [smem:[#allocation7 + %s1278_s12]]  ;;  %s269_s15 = sadd.s32 %s1176_s11, %s952_s13 }
  0x5a   : >> { %s270_s19 = scalar_lea.vmem [#allocation2], %s269_s15  ;;  %s271_s20 = scalar_lea.sflag [#allocation4], %s1375_s9 }
  0x5f   : >> { %s267_s18 = scalar_lea.vmem %s1368_s3, %s266_s14 }
  0x60   : >> { %v290_v2 = vld [vmem:[%s267_s18] sm:$0x1] }
  0x61   : >> { %291 = vst [vmem:[%s270_s19] sm:$0x1] %v290_v2 }
  0x62   : >> { %317 = vsyncadd %s271_s20, 16  ;;  %s1178_s21 = smov 0  }
  0x63 LB: >>> { %s953_s22 = sshll.u32 %s1278_s12, 3  ;;  %s954_s23 = sshll.u32 %s1176_s11, 3  ;;  %s1180_s21 = sphi %s1178_s21, %s323_s21  }
  0x64   : >>> { %s325_s24 = sadd.s32 %s1180_s21, %s953_s22  ;;  %s329_s25 = sadd.s32 %s1180_s21, %s954_s23 }
  0x65   : >>> { %s326_s26 = sld [smem:[#allocation8 + %s325_s24]]  ;;  %s955_s0 = sshll.u32 %s1375_s9, 6 }
  0x66   : >>> { %s331_s29 = sadd.s32 %s955_s0, %s329_s25  ;;  %s333_s15 = scalar_lea.sflag [#allocation5], %s1375_s9 }
  0x67   : >>> { %s332_s14 = scalar_lea.vmem [#allocation3], %s331_s29 }
  0x6b   : >>> { %s327_s13 = scalar_lea.vmem %s1369_s4, %s326_s26 }
  0x6c   : >>> { %v352_v3 = vld [vmem:[%s327_s13] sm:$0x1] }
  0x6d   : >>> { %353 = vst [vmem:[%s332_s14] sm:$0x1] %v352_v3 }
  0x6e   : >>> { %379 = vsyncadd %s333_s15, 16  ;;  %s323_s21 = sadd.s32 1, %s1180_s21  }
  0x6f   : >>> { %p320_p6 = scmp.ge.s32.totalorder %s323_s21, 8  }
  0x70   : >> { %s264_s11 = sadd.s32 (%p320_p6), 1, %s1176_s11  }
  0x71   : >> { %322 = sbr.rel (!%p320_p6) target bundleno = 99 (0x63), region = 302  ;;  %p261_p7 = scmp.ge.s32.totalorder (%p320_p6), %s264_s11, 8  }
  0x76   : > { %263 = sbr.rel (!%p261_p7) target bundleno = 88 (0x58), region = 313 }
  0x7b PF: > { %p380_p8 = scmp.lt.s32.totalorder %s1235_s27, 0  ;;  %s381_s16 = ssub.s32 0, %s1235_s27 }
  0x7c   : > { %s956_s17 = smin.u32 %s1235_s27, %s381_s16  ;;  %s1182_s12 = smov 0  }
  0x7d   : > { %s383_s18 = sand.u32 1, %s956_s17  }
  0x7e   : > { %s384_s19 = ssub.s32 0, %s383_s18 }
  0x7f   : > { %s1377_s19 = smov (!%p380_p8, %s384_s19), %s383_s18 }
  0x80   : > { %p958_p9 = scmp.lt.s32.totalorder %s1377_s19, 0  ;;  %s390_s20 = sadd.s32 2, %s1377_s19 }
  0x82   : > { %s1379_s20 = smov (!%p958_p9, %s390_s20), %s1377_s19 }
  0x83 LB: >> { %s398_s11 = scalar_lea.sflag [#allocation4], %s1379_s20  ;;  %s1184_s12 = sphi %s1182_s12, %s397_s12  }
  0x84   : >> { %1158 = dma.done.wait %s398_s11, 16 }
  0x85   : >> { %1159 = vsyncadd %s398_s11, 4294967280  ;;  %s1186_s6 = smov 0  }
  0x86 LB: >>> { %s408_s9 = scalar_lea.sflag [#allocation5], %s1379_s20  ;;  %s1188_s6 = sphi %s1186_s6, %s407_s6  }
  0x87   : >>> { %1160 = dma.done.wait %s408_s9, 16 }
  0x88   : >>> { %1161 = vsyncadd %s408_s9, 4294967280  ;;  %s407_s6 = sadd.s32 1, %s1188_s6  }
  0x89   : >>> { %p404_p10 = scmp.ge.s32.totalorder %s407_s6, 8  }
  0x8a   : >> { %s397_s12 = sadd.s32 (%p404_p10), 1, %s1184_s12  }
  0x8b   : >> { %406 = sbr.rel (!%p404_p10) target bundleno = 134 (0x86), region = 324  ;;  %p394_p11 = scmp.ge.s32.totalorder (%p404_p10), %s397_s12, 8  }
  0x90   : > { %396 = sbr.rel (!%p394_p11) target bundleno = 131 (0x83), region = 335  ;;  %s959_s21 = sshll.u32 (%p394_p11), %s1379_s20, 3  ;;  %v429_v4 = vlaneseq (%p394_p11)  ;;  %v1192_v5 = vmov (%p394_p11), 1966171168   ;;  %vm653_vm0 = vcmask (%p394_p11), 1041409   ;;  %vm655_vm1 = vcmask (%p394_p11), 1042434  }
  0x91   : > { %v427_v6 = vunpack.c.l.s4 (%p394_p11), %v1192_v5  ;;  %s412_s22 = scalar_lea.vmem (%p394_p11), [#allocation2], %s959_s21  ;;  %s960_s23 = sshll.u32 (%p394_p11), %s1379_s20, 6  ;;  %vm657_vm2 = vcmask (%p394_p11), 1043459   ;;  %vm659_vm3 = vcmask (%p394_p11), 1044484   ;;  %vm661_vm4 = vcmask (%p394_p11), 1045509  }
  0x92   : > { %v413_v7 = vld [vmem:[%s412_s22] sm:$0xff] (%p394_p11)  ;;  %v1306_v8 = vshrl.u32 (%p394_p11), %v429_v4, 7  ;;  %s1311_s24 = scalar_lea.vmem (%p394_p11), [#allocation3], %s960_s23  ;;  %s969_s25 = sshll.u32 (%p394_p11), %s1235_s27, 3  ;;  %vm663_vm5 = vcmask (%p394_p11), 1046534   ;;  %vm665_vm6 = vcmask (%p394_p11), 1047559  }
  0x93   : > { %v428_v9 = vunpack.c.0.s8 (%p394_p11), %v427_v6  ;;  %v425_v10 = vcombine.high (%p394_p11), %v413_v7, %v413_v7  ;;  %v416_v18 = vld [vmem:[%s1311_s24] sm:$0xff] (%p394_p11)  ;;  %v418_v24 = vld [vmem:[%s1311_s24 + $0x10] sm:$0xff] (%p394_p11)  ;;  %v417_v25 = vld [vmem:[%s1311_s24 + $0x8] sm:$0xff] (%p394_p11)  ;;  %vm759_vm8 = vcmask (%p394_p11), 64512  }
  0x94   : > { %v476_v13 = vsub.s32 (%p394_p11), 0, %v1306_v8  ;;  %v421_v30 = vld [vmem:[%s1311_s24 + $0x28] sm:$0xff] (%p394_p11)  ;;  %v420_v36 = vld [vmem:[%s1311_s24 + $0x20] sm:$0xff] (%p394_p11)  ;;  %v419_v40 = vld [vmem:[%s1311_s24 + $0x18] sm:$0xff] (%p394_p11) }
  0x95   : > { %v431_v11 = vsub.s32 %v428_v9, %v1306_v8  ;;  %v422_v43 = vld [vmem:[%s1311_s24 + $0x30] sm:$0xff]  ;;  %v423_v46 = vld [vmem:[%s1311_s24 + $0x38] sm:$0xff] }
  0x97   : > { %v432_v12 = vrot.slane %v413_v7, %v431_v11  ;;  %v439_v14 = vrot.slane %v425_v10, %v431_v11 }
  0x99   : > { %v448_v15 = vrot.slane %v432_v12, %v431_v11  ;;  %v440_v16 = vcombine.high %v432_v12, %v432_v12  ;;  %v441_v17 = vcombine.high %v439_v14, %v439_v14  ;;  %v455_v19 = vrot.slane %v439_v14, %v431_v11 }
  0x9b   : > { %v477_v20 = vrot.slane %v448_v15, %v476_v13  ;;  %v470_v21 = vcombine.high %v448_v15, %v448_v15  ;;  %v462_v22 = vrot.slane %v440_v16, %v431_v11  ;;  %v469_v23 = vrot.slane %v441_v17, %v431_v11 }
  0x9c   : > { %v493_v34 = vrot.slane %v455_v19, %v476_v13  ;;  %v471_v35 = vcombine.high %v455_v19, %v455_v19 }
  0x9d   : > { %v514_v26 = vmul.f32 %v477_v20, %v416_v18  ;;  %v485_v27 = vrot.slane %v470_v21, %v476_v13  ;;  %v481_v28 = vrot.slane %v462_v22, %v476_v13  ;;  %v497_v29 = vrot.slane %v469_v23, %v476_v13 }
  0x9e   : > { %v472_v31 = vcombine.high %v462_v22, %v462_v22  ;;  %v473_v39 = vcombine.high %v469_v23, %v469_v23  ;;  %v518_v41 = vmul.f32 %v493_v34, %v420_v36  ;;  %v501_v42 = vrot.slane %v471_v35, %v476_v13 }
  0x9f   : > { %522 = vadd.xlane.f32.xlu0 %v514_v26  ;;  %v516_v32 = vmul.f32 %v485_v27, %v418_v24  ;;  %v515_v33 = vmul.f32 %v481_v28, %v417_v25  ;;  %v519_v37 = vmul.f32 %v497_v29, %v421_v30 }
  0xa0   : > { %v489_v38 = vrot.slane %v472_v31, %v476_v13  ;;  %v505_v45 = vrot.slane %v473_v39, %v476_v13  ;;  %v520_v47 = vmul.f32 %v501_v42, %v422_v43 }
  0xa1   : > { %526 = vadd.xlane.f32.xlu1 %v516_v32 }
  0xa2   : > { %v517_v44 = vmul.f32 %v489_v38, %v419_v40  ;;  %v521_v48 = vmul.f32 %v505_v45, %v423_v46 }
  0xa3   : > { %524 = vadd.xlane.f32.xlu0 %v515_v33 }
  0xa5   : > { %532 = vadd.xlane.f32.xlu1 %v519_v37 }
  0xa7   : > { %530 = vadd.xlane.f32.xlu0 %v518_v41 }
  0xa9   : > { %528 = vadd.xlane.f32.xlu1 %v517_v44 }
  0xab   : > { %534 = vadd.xlane.f32.xlu0 %v520_v47 }
  0xad   : > { %536 = vadd.xlane.f32.xlu1 %v521_v48 }
 0x128   : > { %v523_v49 = vpop.xlane.xlu0 %522 }
 0x129   : > { %v961_v50 = vmul.f32 -1.442695, %v523_v49 }
 0x12a   : > { %v527_v51 = vpop.xlane.xlu1 %526 }
 0x12b   : > { %1040 = vpow2.f32 %v961_v50  ;;  %v963_v52 = vmul.f32 -1.442695, %v527_v51  ;;  %v620_v51 = vand.u32 127, %v429_v4 }
 0x12c   : > { %v525_v53 = vpop.xlane.xlu0 %524 }
 0x12d   : > { %1042 = vpow2.f32 %v963_v52  ;;  %v962_v54 = vmul.f32 -1.442695, %v525_v53 }
 0x12e   : > { %v533_v55 = vpop.xlane.xlu1 %532 }
 0x12f   : > { %1044 = vpow2.f32 %v962_v54  ;;  %v966_v56 = vmul.f32 -1.442695, %v533_v55 }
 0x130   : > { %v531_v57 = vpop.xlane.xlu0 %530 }
 0x131   : > { %1046 = vpow2.f32 %v966_v56  ;;  %v965_v58 = vmul.f32 -1.442695, %v531_v57  ;;  %v1323_v57 = vsub.s32 %v620_v51, %v1306_v8 }
 0x132   : > { %v529_v59 = vpop.xlane.xlu1 %528 }
 0x133   : > { %1048 = vpow2.f32 %v965_v58  ;;  %v964_v60 = vmul.f32 -1.442695, %v529_v59 }
 0x134   : > { %v535_v61 = vpop.xlane.xlu0 %534 }
 0x135   : > { %1050 = vpow2.f32 %v964_v60  ;;  %v967_v62 = vmul.f32 -1.442695, %v535_v61 }
 0x136   : > { %v537_v63 = vpop.xlane.xlu1 %536 }
 0x137   : > { %1052 = vpow2.f32 %v967_v62  ;;  %v968_v0 = vmul.f32 -1.442695, %v537_v63 }
 0x138   : > { %v1041_v1 = vpop.eup %1040 }
 0x139   : > { %v562_v2 = vadd.f32 1.0, %v1041_v1  ;;  %1054 = vpow2.f32 %v968_v0 }
 0x13a   : > { %v1043_v3 = vpop.eup %1042 }
 0x13b   : > { %1056 = vrcp.f32 %v562_v2  ;;  %v564_v5 = vadd.f32 1.0, %v1043_v3 }
 0x13c   : > { %v1045_v6 = vpop.eup %1044 }
 0x13d   : > { %1058 = vrcp.f32 %v564_v5  ;;  %v563_v7 = vadd.f32 1.0, %v1045_v6 }
 0x13e   : > { %v1047_v9 = vpop.eup %1046 }
 0x13f   : > { %1060 = vrcp.f32 %v563_v7  ;;  %v567_v10 = vadd.f32 1.0, %v1047_v9 }
 0x140   : > { %v1049_v11 = vpop.eup %1048 }
 0x141   : > { %1062 = vrcp.f32 %v567_v10  ;;  %v566_v12 = vadd.f32 1.0, %v1049_v11 }
 0x142   : > { %v1051_v13 = vpop.eup %1050 }
 0x143   : > { %1064 = vrcp.f32 %v566_v12  ;;  %v565_v14 = vadd.f32 1.0, %v1051_v13 }
 0x144   : > { %v1053_v15 = vpop.eup %1052 }
 0x145   : > { %1066 = vrcp.f32 %v565_v14  ;;  %v568_v16 = vadd.f32 1.0, %v1053_v15 }
 0x146   : > { %v1055_v17 = vpop.eup %1054 }
 0x147   : > { %1068 = vrcp.f32 %v568_v16  ;;  %v569_v18 = vadd.f32 1.0, %v1055_v17 }
 0x148   : > { %v1057_v19 = vpop.eup %1056 }
 0x149   : > { %v587_v20 = vadd.f32 1e-07, %v1057_v19  ;;  %v670_v21 = vsub.f32 1.0, %v1057_v19  ;;  %1070 = vrcp.f32 %v569_v18 }
 0x14a   : > { %v1059_v22 = vpop.eup %1058 }
 0x14b   : > { %v678_v23 = vadd.f32 1e-07, %v670_v21  ;;  %v589_v24 = vadd.f32 1e-07, %v1059_v22  ;;  %v672_v25 = vsub.f32 1.0, %v1059_v22  ;;  %1072 = vlog2.f32 %v587_v20 }
 0x14c   : > { %v1061_v26 = vpop.eup %1060 }
 0x14d   : > { %1074 = vlog2.f32 %v678_v23  ;;  %v680_v27 = vadd.f32 1e-07, %v672_v25  ;;  %v588_v28 = vadd.f32 1e-07, %v1061_v26  ;;  %v671_v29 = vsub.f32 1.0, %v1061_v26 }
 0x14e   : > { %v1063_v30 = vpop.eup %1062  ;;  %1076 = vlog2.f32 %v589_v24  ;;  %v755_v24 = vstv %s969_s25 }
 0x14f   : > { %1078 = vlog2.f32 %v680_v27  ;;  %v679_v31 = vadd.f32 1e-07, %v671_v29  ;;  %v592_v32 = vadd.f32 1e-07, %v1063_v30  ;;  %v675_v33 = vsub.f32 1.0, %v1063_v30 }
 0x150   : > { %v1065_v34 = vpop.eup %1064  ;;  %1080 = vlog2.f32 %v588_v28 }
 0x151   : > { %1082 = vlog2.f32 %v679_v31  ;;  %v683_v35 = vadd.f32 1e-07, %v675_v33  ;;  %v591_v36 = vadd.f32 1e-07, %v1065_v34  ;;  %v674_v37 = vsub.f32 1.0, %v1065_v34  ;;  %v586_v31 = vld [vmem:[%s1251_s10] sm:$0xff] }
 0x152   : > { %v1067_v38 = vpop.eup %1066  ;;  %1084 = vlog2.f32 %v592_v32 }
 0x153   : > { %1086 = vlog2.f32 %v683_v35  ;;  %v682_v39 = vadd.f32 1e-07, %v674_v37  ;;  %v590_v40 = vadd.f32 1e-07, %v1067_v38  ;;  %v673_v41 = vsub.f32 1.0, %v1067_v38 }
 0x154   : > { %v1069_v42 = vpop.eup %1068  ;;  %1088 = vlog2.f32 %v591_v36 }
 0x155   : > { %1090 = vlog2.f32 %v682_v39  ;;  %v681_v43 = vadd.f32 1e-07, %v673_v41  ;;  %v593_v44 = vadd.f32 1e-07, %v1069_v42  ;;  %v676_v45 = vsub.f32 1.0, %v1069_v42 }
 0x156   : > { %v1071_v46 = vpop.eup %1070  ;;  %1092 = vlog2.f32 %v590_v40 }
 0x157   : > { %1094 = vlog2.f32 %v681_v43  ;;  %v594_v47 = vadd.f32 1e-07, %v1071_v46  ;;  %v677_v48 = vsub.f32 1.0, %v1071_v46  ;;  %v684_v49 = vadd.f32 1e-07, %v676_v45 }
 0x158   : > { %1096 = vlog2.f32 %v593_v44  ;;  %v1073_v50 = vpop.eup %1072  ;;  %v669_v46 = vsub.f32 1.0, %v586_v31 }
 0x159   : > { %1098 = vlog2.f32 %v594_v47  ;;  %v685_v52 = vadd.f32 1e-07, %v677_v48  ;;  %v596_v58 = vmul.f32 0.6931472, %v1073_v50 }
 0x15a   : > { %v1075_v53 = vpop.eup %1074  ;;  %1100 = vlog2.f32 %v684_v49 }
 0x15b   : > { %v1077_v54 = vpop.eup %1076  ;;  %1102 = vlog2.f32 %v685_v52  ;;  %v687_v60 = vmul.f32 0.6931472, %v1075_v53  ;;  %v624_v6 = vrot.slane %v596_v58, %v1323_v57  ;;  %v756_v52 = vadd.s32 %v755_v24, %v1306_v8 }
 0x15c   : > { %v1079_v55 = vpop.eup %1078  ;;  %v600_v0 = vmul.f32 0.6931472, %v1077_v54 }
 0x15d   : > { %v1081_v56 = vpop.eup %1080  ;;  %v691_v3 = vmul.f32 0.6931472, %v1079_v55  ;;  %v713_v11 = vrot.slane %v687_v60, %v1323_v57  ;;  %vm757_vm7 = vcmp.lt.s32.totalorder %v756_v52, 20 }
 0x15e   : > { %v1083_v59 = vpop.eup %1082  ;;  %v598_v61 = vmul.f32 0.6931472, %v1081_v56  ;;  %v632_v17 = vrot.slane %v600_v0, %v1323_v57 }
 0x15f   : > { %v1085_v62 = vpop.eup %1084  ;;  %v689_v63 = vmul.f32 0.6931472, %v1083_v59  ;;  %v721_v23 = vrot.slane %v691_v3, %v1323_v57 }
 0x160   : > { %v1087_v4 = vpop.eup %1086  ;;  %v628_v1 = vrot.slane %v598_v61, %v1323_v57  ;;  %v606_v5 = vmul.f32 0.6931472, %v1085_v62 }
 0x161   : > { %v1089_v2 = vpop.eup %1088  ;;  %v717_v7 = vrot.slane %v689_v63, %v1323_v57  ;;  %v697_v10 = vmul.f32 0.6931472, %v1087_v4 }
 0x162   : > { %v1091_v9 = vpop.eup %1090  ;;  %v604_v13 = vmul.f32 0.6931472, %v1089_v2  ;;  %v654_v14 = vsel %vm653_vm0, %v628_v1, %v624_v6  ;;  %v644_v21 = vrot.slane %v606_v5, %v1323_v57 }
 0x163   : > { %v1093_v12 = vpop.eup %1092  ;;  %v695_v18 = vmul.f32 0.6931472, %v1091_v9  ;;  %v742_v19 = vsel %vm653_vm0, %v717_v7, %v713_v11  ;;  %v656_v28 = vsel %vm655_vm1, %v632_v17, %v654_v14  ;;  %v733_v29 = vrot.slane %v697_v10, %v1323_v57 }
 0x164   : > { %v1095_v15 = vpop.eup %1094  ;;  %v602_v16 = vmul.f32 0.6931472, %v1093_v12  ;;  %v640_v33 = vrot.slane %v604_v13, %v1323_v57  ;;  %v743_v35 = vsel %vm655_vm1, %v721_v23, %v742_v19 }
 0x165   : > { %v1097_v20 = vpop.eup %1096  ;;  %v693_v22 = vmul.f32 0.6931472, %v1095_v15  ;;  %v729_v40 = vrot.slane %v695_v18, %v1323_v57 }
 0x166   : > { %v1099_v25 = vpop.eup %1098  ;;  %v608_v26 = vmul.f32 0.6931472, %v1097_v20  ;;  %v636_v27 = vrot.slane %v602_v16, %v1323_v57 }
 0x167   : > { %v1101_v30 = vpop.eup %1100  ;;  %v610_v32 = vmul.f32 0.6931472, %v1099_v25  ;;  %v725_v34 = vrot.slane %v693_v22, %v1323_v57 }
 0x168   : > { %v1103_v36 = vpop.eup %1102  ;;  %v648_v37 = vrot.slane %v608_v26, %v1323_v57  ;;  %v658_v38 = vsel %vm657_vm2, %v636_v27, %v656_v28  ;;  %v699_v39 = vmul.f32 0.6931472, %v1101_v30 }
 0x169   : > { %v652_v41 = vrot.slane %v610_v32, %v1323_v57  ;;  %v660_v42 = vsel %vm659_vm3, %v640_v33, %v658_v38  ;;  %v701_v43 = vmul.f32 0.6931472, %v1103_v36  ;;  %v744_v44 = vsel %vm657_vm2, %v725_v34, %v743_v35 }
 0x16a   : > { %v662_v45 = vsel %vm661_vm4, %v644_v21, %v660_v42  ;;  %v737_v47 = vrot.slane %v699_v39, %v1323_v57  ;;  %v745_v48 = vsel %vm659_vm3, %v729_v40, %v744_v44 }
 0x16b   : > { %v664_v49 = vsel %vm663_vm5, %v648_v37, %v662_v45  ;;  %v741_v50 = vrot.slane %v701_v43, %v1323_v57  ;;  %v746_v51 = vsel %vm661_vm4, %v733_v29, %v745_v48 }
 0x16c   : > { %v666_v53 = vsel %vm665_vm6, %v652_v41, %v664_v49  ;;  %v747_v54 = vsel %vm663_vm5, %v737_v47, %v746_v51 }
 0x16d   : > { %v748_v55 = vsel %vm665_vm6, %v741_v50, %v747_v54  ;;  %v668_v56 = vmul.f32 %v666_v53, %v586_v31 }
 0x16e   : > { %v750_v58 = vmul.f32 %v748_v55, %v669_v46 }
 0x170   : > { %v751_v59 = vadd.f32 %v750_v58, %v668_v56 }
 0x172   : > { %v758_v60 = vsel %vm757_vm7, %v751_v59, 0.0 }
 0x173   : > { %v760_v61 = vsel %vm759_vm8, %v758_v60, 0.0 }
 0x174   : > { %761 = vadd.xlane.f32.xlu0 %v760_v61 }
 0x1fd   : > { %v762_v57 = vpop.xlane.xlu0 %761 }
 0x1fe   : > { %v763_v62 = vrot.slane %v762_v57, 4 }
 0x200   : > { %v764_v63 = vadd.f32 %v763_v62, %v762_v57 }
 0x202   : > { %v765_v4 = vrot.slane %v764_v63, 2 }
 0x204   : > { %v766_v8 = vadd.f32 %v765_v4, %v764_v63 }
 0x206   : > { %v767_v0 = vrot.slane %v766_v8, 1 }
 0x208   : > { %v768_v1 = vadd.f32 %v767_v0, %v766_v8 }
 0x20a   : > { %978 = vpush %v768_v1 }
 0x23b   : > { %s979_s27 = spop %978 }
 0x23c   : > { %v770_v2 = vstv %s979_s27 }
 0x23d   : > { %771 = vst [vmem:[%s123_s7] sm:$0x1] %v770_v2 }
 0x23e PF: > { %s25_s1 = sadd.s32 1, %s1164_s1  }
 0x23f   : > { %p22_p12 = scmp.ge.s32.totalorder %s25_s1, 5  }
 0x241   :  { %24 = sbr.rel (!%p22_p12) target bundleno = 26 (0x1a), region = 346 }
 0x246   :  { %789 = vsyncmov [#allocation4] }
 0x249   :  { %s790_s0 = vpop.sfrf %789 }
 0x24a   :  { %p972_p13 = scmp.ne.s32.totalorder %s790_s0, 0 }
 0x24c   :  { %794 = shalt.err (%p972_p13)  }
 0x24d   :  { %796 = vsyncmov [#allocation4 + $0x1] }
 0x250   :  { %s797_s29 = vpop.sfrf %796 }
 0x251   :  { %p973_p0 = scmp.ne.s32.totalorder %s797_s29, 0 }
 0x253   :  { %801 = shalt.err (%p973_p0)  }
 0x254   :  { %802 = vsyncmov [#allocation5] }
 0x257   :  { %s803_s30 = vpop.sfrf %802 }
 0x258   :  { %p974_p1 = scmp.ne.s32.totalorder %s803_s30, 0 }
 0x25a   :  { %807 = shalt.err (%p974_p1)  }
 0x25b   :  { %809 = vsyncmov [#allocation5 + $0x1] }
 0x25e   :  { %s810_s28 = vpop.sfrf %809 }
 0x25f   :  { %p975_p2 = scmp.ne.s32.totalorder %s810_s28, 0 }
 0x261   :  { %814 = shalt.err (%p975_p2)  }

</bundles_post_ra>
